<compile_context>
chip_gen: v7x
topology: tpu7x:2x2x1
jax: 0.10.0
libtpu: 0.0.40
codegen_flags: <defaults>
</compile_context>

<pallas_src>
import functools

import jax
import jax.numpy as jnp
from jax.experimental import pallas as pl
from jax.experimental.pallas import tpu as pltpu


def mlp_kernel(x_ref, w1_ref, b1_ref, w2_ref, b2_ref,
               w3_ref, b3_ref, w4_ref, b4_ref, o_ref):
    """Whole fused MLP for one batch tile. bf16 MXU matmuls, f32 accumulate."""
    # In-kernel f32 -> bf16 cast of the activation tile (avoids a separate
    # wrapper-side bf16 copy of x through HBM).
    h = jnp.dot(x_ref[...].astype(jnp.bfloat16), w1_ref[...],
                preferred_element_type=jnp.float32) + b1_ref[...]
    # Cast-then-ReLU is bit-identical to ReLU-then-cast (monotone, 0-preserving
    # cast) and keeps the max on bf16 vregs.  Bias add stays in f32.
    h = jnp.maximum(h.astype(jnp.bfloat16), 0)
    h = jnp.dot(h, w2_ref[...], preferred_element_type=jnp.float32) + b2_ref[...]
    h = jnp.maximum(h.astype(jnp.bfloat16), 0)
    h = jnp.dot(h, w3_ref[...], preferred_element_type=jnp.float32) + b3_ref[...]
    h = jnp.maximum(h.astype(jnp.bfloat16), 0)
    h = jnp.dot(h, w4_ref[...], preferred_element_type=jnp.float32) + b4_ref[...]
    o_ref[...] = h.astype(o_ref.dtype)


def _round_up(n, m):
    return ((n + m - 1) // m) * m


def _pick_block_b(B, block_b):
    """Static batch-tile size: multiple of 8 (or == B); >=2 grid steps on large
    batches so v7x's two TensorCores both get work."""
    if B <= 16:
        return B
    half = _round_up((B + 1) // 2, 8)      # caps tile at ~half the batch
    blk = min(block_b, half, B)
    blk = max(8, (blk // 8) * 8)
    return blk


@functools.partial(jax.jit, static_argnames=("block_b",))
def netleaky_forward(x, params, block_b=8192):
    """x: [B, input_dim] float32; params: prepared dict (bf16 weights, f32 biases)."""
    B, in_dim = x.shape
    w1, b1 = params["w1"], params["b1"]
    w2, b2 = params["w2"], params["b2"]
    w3, b3 = params["w3"], params["b3"]
    w4, b4 = params["w4"], params["b4"]
    out_dim = w4.shape[1]

    blk = _pick_block_b(B, block_b)
    grid = (pl.cdiv(B, blk),)

    def rep(shape):
        # Constant block index -> stays resident in VMEM across all grid steps.
        return pl.BlockSpec(shape, lambda i: (0, 0))

    return pl.pallas_call(
        mlp_kernel,
        out_shape=jax.ShapeDtypeStruct((B, out_dim), jnp.float32),
        grid_spec=pltpu.PrefetchScalarGridSpec(
            num_scalar_prefetch=0,
            grid=grid,
            in_specs=[
                pl.BlockSpec((blk, in_dim), lambda i: (i, 0)),  # x tile (f32)
                rep(w1.shape), rep(b1.shape),
                rep(w2.shape), rep(b2.shape),
                rep(w3.shape), rep(b3.shape),
                rep(w4.shape), rep(b4.shape),
            ],
            out_specs=pl.BlockSpec((blk, out_dim), lambda i: (i, 0)),
        ),
        compiler_params=pltpu.CompilerParams(
            dimension_semantics=("parallel",),
        ),
    )(x, w1, b1, w2, b2, w3, b3, w4, b4)


def init_params(key, input_dim, output_dim):
    """Deterministic f32 init mimicking PyTorch nn.Linear default U[-1/sqrt(fan_in), +]."""
    dims = [(input_dim, 32), (32, 32), (32, 64), (64, output_dim)]
    params = {}
    for idx, (fan_in, fan_out) in enumerate(dims, start=1):
        key, kw, kb = jax.random.split(key, 3)
        bound = 1.0 / jnp.sqrt(float(fan_in))
        # weight stored [in, out] (transposed vs. PyTorch's [out, in])
        params[f"w{idx}"] = jax.random.uniform(
            kw, (fan_in, fan_out), jnp.float32, -bound, bound)
        # bias kept 2D (1, out) so it broadcasts cleanly inside the kernel
        params[f"b{idx}"] = jax.random.uniform(
            kb, (1, fan_out), jnp.float32, -bound, bound)
    return params


def prepare_params(params):
    """One-time prep for the kernel: weights -> bf16 (MXU-native), biases stay f32."""
    prepped = {}
    for idx in range(1, 5):
        prepped[f"w{idx}"] = params[f"w{idx}"].astype(jnp.bfloat16)
        prepped[f"b{idx}"] = params[f"b{idx}"]
    return prepped


def reference_forward_f32(x, params):
    """Pure f32 reference (matches PyTorch forward exactly)."""
    h = jnp.maximum(x @ params["w1"] + params["b1"], 0.0)
    h = jnp.maximum(h @ params["w2"] + params["b2"], 0.0)
    h = jnp.maximum(h @ params["w3"] + params["b3"], 0.0)
    return h @ params["w4"] + params["b4"]


def reference_forward_bf16(x, params):
    """Reference matching the kernel's bf16-input / f32-accumulate numerics."""
    def lin(h, w, b):
        return jnp.dot(h.astype(jnp.bfloat16), w.astype(jnp.bfloat16),
                       preferred_element_type=jnp.float32) + b
    h = jnp.maximum(lin(x, params["w1"], params["b1"]), 0.0)
    h = jnp.maximum(lin(h, params["w2"], params["b2"]), 0.0)
    h = jnp.maximum(lin(h, params["w3"], params["b3"]), 0.0)
    return lin(h, params["w4"], params["b4"])


if __name__ == "__main__":
    key = jax.random.PRNGKey(0)
    input_dim, output_dim, batch = 16, 8, 8

    kx, kp, kx2 = jax.random.split(key, 3)
    x = jax.random.normal(kx, (batch, input_dim), jnp.float32)
    params = init_params(kp, input_dim, output_dim)
    prepped = prepare_params(params)   # one-time bf16 weight prep, outside jit

    # Small single-tile run (block_b clamps to batch).
    out = jax.block_until_ready(netleaky_forward(x, prepped))
    assert out.shape == (batch, output_dim)

    ref_bf = reference_forward_bf16(x, params)
    ref_f32 = reference_forward_f32(x, params)
    assert jnp.allclose(out, ref_bf, atol=1e-3, rtol=1e-3), "mismatch vs bf16 ref"
    assert jnp.allclose(out, ref_f32, atol=5e-2, rtol=5e-2), "mismatch vs f32 ref"

    # Multi-tile run with a non-multiple batch (partial last tile) and an
    # explicit small tile to exercise the grid path.
    B2 = 300
    x2 = jax.random.normal(kx2, (B2, input_dim), jnp.float32)
    out2 = jax.block_until_ready(netleaky_forward(x2, prepped, block_b=128))
    assert out2.shape == (B2, output_dim)
    assert jnp.allclose(out2, reference_forward_bf16(x2, params),
                        atol=1e-3, rtol=1e-3), "mismatch on multi-tile batch"

    # Default-block path on the same batch (>=2 grid steps for v7x megacore).
    out3 = jax.block_until_ready(netleaky_forward(x2, prepped))
    assert jnp.allclose(out3, out2, atol=1e-6, rtol=1e-6), "tile-size dependence"

    print("KERNEL_OK")
</pallas_src>

<mosaic_0001>
module attributes {stable_mosaic.version = 11 : i64} {
  func.func @mlp_kernel(%arg0: i32, %arg1: memref<8x16xf32, #tpu.memory_space<vmem>>, %arg2: memref<16x32xbf16, #tpu.memory_space<vmem>>, %arg3: memref<1x32xf32, #tpu.memory_space<vmem>>, %arg4: memref<32x32xbf16, #tpu.memory_space<vmem>>, %arg5: memref<1x32xf32, #tpu.memory_space<vmem>>, %arg6: memref<32x64xbf16, #tpu.memory_space<vmem>>, %arg7: memref<1x64xf32, #tpu.memory_space<vmem>>, %arg8: memref<64x8xbf16, #tpu.memory_space<vmem>>, %arg9: memref<1x8xf32, #tpu.memory_space<vmem>>, %arg10: memref<8x8xf32, #tpu.memory_space<vmem>>) attributes {dimension_semantics = [#tpu.dimension_semantics<parallel>], iteration_bounds = array<i64: 1>, scalar_prefetch = 0 : i64, scratch_operands = 0 : i64, tpu.core_type = #tpu.core_type<tc>, window_params = [{transform_indices = @transform_0, window_bounds = array<i64: 8, 16>}, {pipeline_mode = #tpu.pipeline_mode<synchronous>, transform_indices = @transform_1, window_bounds = array<i64: 16, 32>}, {pipeline_mode = #tpu.pipeline_mode<synchronous>, transform_indices = @transform_2, window_bounds = array<i64: 1, 32>}, {pipeline_mode = #tpu.pipeline_mode<synchronous>, transform_indices = @transform_3, window_bounds = array<i64: 32, 32>}, {pipeline_mode = #tpu.pipeline_mode<synchronous>, transform_indices = @transform_4, window_bounds = array<i64: 1, 32>}, {pipeline_mode = #tpu.pipeline_mode<synchronous>, transform_indices = @transform_5, window_bounds = array<i64: 32, 64>}, {pipeline_mode = #tpu.pipeline_mode<synchronous>, transform_indices = @transform_6, window_bounds = array<i64: 1, 64>}, {pipeline_mode = #tpu.pipeline_mode<synchronous>, transform_indices = @transform_7, window_bounds = array<i64: 64, 8>}, {pipeline_mode = #tpu.pipeline_mode<synchronous>, transform_indices = @transform_8, window_bounds = array<i64: 1, 8>}, {transform_indices = @transform_9, window_bounds = array<i64: 8, 8>}]} {
    %c0 = arith.constant 0 : index
    %c0_0 = arith.constant 0 : index
    %0 = vector.load %arg1[%c0, %c0_0] : memref<8x16xf32, #tpu.memory_space<vmem>>, vector<8x16xf32>
    %1 = arith.truncf %0 : vector<8x16xf32> to vector<8x16xbf16>
    %c0_1 = arith.constant 0 : index
    %c0_2 = arith.constant 0 : index
    %2 = vector.load %arg2[%c0_1, %c0_2] : memref<16x32xbf16, #tpu.memory_space<vmem>>, vector<16x32xbf16>
    %cst = arith.constant dense<0.000000e+00> : vector<8x32xf32>
    %3 = tpu.matmul %1, %2, %cst {dimension_numbers = #tpu.dot_dimension_numbers<[1], [0], [0], [1], [0, 0, 1, 1], [], []>} : vector<8x16xbf16>, vector<16x32xbf16>, vector<8x32xf32> -> vector<8x32xf32>
    %c0_3 = arith.constant 0 : index
    %c0_4 = arith.constant 0 : index
    %4 = vector.load %arg3[%c0_3, %c0_4] : memref<1x32xf32, #tpu.memory_space<vmem>>, vector<1x32xf32>
    %5 = vector.broadcast %4 : vector<1x32xf32> to vector<8x32xf32>
    %6 = arith.addf %3, %5 : vector<8x32xf32>
    %7 = arith.truncf %6 : vector<8x32xf32> to vector<8x32xbf16>
    %cst_5 = arith.constant 0.000000e+00 : bf16
    %8 = vector.broadcast %cst_5 : bf16 to vector<8x32xbf16>
    %9 = arith.maximumf %7, %8 : vector<8x32xbf16>
    %c0_6 = arith.constant 0 : index
    %c0_7 = arith.constant 0 : index
    %10 = vector.load %arg4[%c0_6, %c0_7] : memref<32x32xbf16, #tpu.memory_space<vmem>>, vector<32x32xbf16>
    %cst_8 = arith.constant dense<0.000000e+00> : vector<8x32xf32>
    %11 = tpu.matmul %9, %10, %cst_8 {dimension_numbers = #tpu.dot_dimension_numbers<[1], [0], [0], [1], [0, 0, 1, 1], [], []>} : vector<8x32xbf16>, vector<32x32xbf16>, vector<8x32xf32> -> vector<8x32xf32>
    %c0_9 = arith.constant 0 : index
    %c0_10 = arith.constant 0 : index
    %12 = vector.load %arg5[%c0_9, %c0_10] : memref<1x32xf32, #tpu.memory_space<vmem>>, vector<1x32xf32>
    %13 = vector.broadcast %12 : vector<1x32xf32> to vector<8x32xf32>
    %14 = arith.addf %11, %13 : vector<8x32xf32>
    %15 = arith.truncf %14 : vector<8x32xf32> to vector<8x32xbf16>
    %cst_11 = arith.constant 0.000000e+00 : bf16
    %16 = vector.broadcast %cst_11 : bf16 to vector<8x32xbf16>
    %17 = arith.maximumf %15, %16 : vector<8x32xbf16>
    %c0_12 = arith.constant 0 : index
    %c0_13 = arith.constant 0 : index
    %18 = vector.load %arg6[%c0_12, %c0_13] : memref<32x64xbf16, #tpu.memory_space<vmem>>, vector<32x64xbf16>
    %cst_14 = arith.constant dense<0.000000e+00> : vector<8x64xf32>
    %19 = tpu.matmul %17, %18, %cst_14 {dimension_numbers = #tpu.dot_dimension_numbers<[1], [0], [0], [1], [0, 0, 1, 1], [], []>} : vector<8x32xbf16>, vector<32x64xbf16>, vector<8x64xf32> -> vector<8x64xf32>
    %c0_15 = arith.constant 0 : index
    %c0_16 = arith.constant 0 : index
    %20 = vector.load %arg7[%c0_15, %c0_16] : memref<1x64xf32, #tpu.memory_space<vmem>>, vector<1x64xf32>
    %21 = vector.broadcast %20 : vector<1x64xf32> to vector<8x64xf32>
    %22 = arith.addf %19, %21 : vector<8x64xf32>
    %23 = arith.truncf %22 : vector<8x64xf32> to vector<8x64xbf16>
    %cst_17 = arith.constant 0.000000e+00 : bf16
    %24 = vector.broadcast %cst_17 : bf16 to vector<8x64xbf16>
    %25 = arith.maximumf %23, %24 : vector<8x64xbf16>
    %c0_18 = arith.constant 0 : index
    %c0_19 = arith.constant 0 : index
    %26 = vector.load %arg8[%c0_18, %c0_19] : memref<64x8xbf16, #tpu.memory_space<vmem>>, vector<64x8xbf16>
    %cst_20 = arith.constant dense<0.000000e+00> : vector<8x8xf32>
    %27 = tpu.matmul %25, %26, %cst_20 {dimension_numbers = #tpu.dot_dimension_numbers<[1], [0], [0], [1], [0, 0, 1, 1], [], []>} : vector<8x64xbf16>, vector<64x8xbf16>, vector<8x8xf32> -> vector<8x8xf32>
    %c0_21 = arith.constant 0 : index
    %c0_22 = arith.constant 0 : index
    %28 = vector.load %arg9[%c0_21, %c0_22] : memref<1x8xf32, #tpu.memory_space<vmem>>, vector<1x8xf32>
    %29 = vector.broadcast %28 : vector<1x8xf32> to vector<8x8xf32>
    %30 = arith.addf %27, %29 : vector<8x8xf32>
    %c0_23 = arith.constant 0 : index
    %c0_24 = arith.constant 0 : index
    %31 = vector.load %arg10[%c0_23, %c0_24] : memref<8x8xf32, #tpu.memory_space<vmem>>, vector<8x8xf32>
    tpu.vector_store %arg10[%c0_23, %c0_24], %30 {strides = array<i32>} : memref<8x8xf32, #tpu.memory_space<vmem>>, vector<8x8xf32>,
    return
  }
  func.func @transform_0(%arg0: i32) -> (i32, i32) {
    %c0_i32 = arith.constant 0 : i32
    %c0_i32_0 = arith.constant 0 : i32
    return %arg0, %c0_i32 : i32, i32
  }
  func.func @transform_1(%arg0: i32) -> (i32, i32) {
    %c0_i32 = arith.constant 0 : i32
    %c0_i32_0 = arith.constant 0 : i32
    %c0_i32_1 = arith.constant 0 : i32
    return %c0_i32, %c0_i32_0 : i32, i32
  }
  func.func @transform_2(%arg0: i32) -> (i32, i32) {
    %c0_i32 = arith.constant 0 : i32
    %c0_i32_0 = arith.constant 0 : i32
    %c0_i32_1 = arith.constant 0 : i32
    return %c0_i32, %c0_i32_0 : i32, i32
  }
  func.func @transform_3(%arg0: i32) -> (i32, i32) {
    %c0_i32 = arith.constant 0 : i32
    %c0_i32_0 = arith.constant 0 : i32
    %c0_i32_1 = arith.constant 0 : i32
    return %c0_i32, %c0_i32_0 : i32, i32
  }
  func.func @transform_4(%arg0: i32) -> (i32, i32) {
    %c0_i32 = arith.constant 0 : i32
    %c0_i32_0 = arith.constant 0 : i32
    %c0_i32_1 = arith.constant 0 : i32
    return %c0_i32, %c0_i32_0 : i32, i32
  }
  func.func @transform_5(%arg0: i32) -> (i32, i32) {
    %c0_i32 = arith.constant 0 : i32
    %c0_i32_0 = arith.constant 0 : i32
    %c0_i32_1 = arith.constant 0 : i32
    return %c0_i32, %c0_i32_0 : i32, i32
  }
  func.func @transform_6(%arg0: i32) -> (i32, i32) {
    %c0_i32 = arith.constant 0 : i32
    %c0_i32_0 = arith.constant 0 : i32
    %c0_i32_1 = arith.constant 0 : i32
    return %c0_i32, %c0_i32_0 : i32, i32
  }
  func.func @transform_7(%arg0: i32) -> (i32, i32) {
    %c0_i32 = arith.constant 0 : i32
    %c0_i32_0 = arith.constant 0 : i32
    %c0_i32_1 = arith.constant 0 : i32
    return %c0_i32, %c0_i32_0 : i32, i32
  }
  func.func @transform_8(%arg0: i32) -> (i32, i32) {
    %c0_i32 = arith.constant 0 : i32
    %c0_i32_0 = arith.constant 0 : i32
    %c0_i32_1 = arith.constant 0 : i32
    return %c0_i32, %c0_i32_0 : i32, i32
  }
  func.func @transform_9(%arg0: i32) -> (i32, i32) {
    %c0_i32 = arith.constant 0 : i32
    %c0_i32_0 = arith.constant 0 : i32
    return %arg0, %c0_i32 : i32, i32
  }
}

</mosaic_0001>

<bundles_post_ra>
// kernel: netleaky_forward.1
= control target key start
LH: loop header
LB: loop body
LE: loop exit
PB: predicated region body
PF: predicated region fallthrough
CT: control target
= control target key end

     0   :  { %14 = vsyncpa [#allocation3], 0  ;;  %s596_s0 = inlined_call_operand.hbm [shape: f32[8,16], index: 0, kind: input, shape index: {}]   ;;  %s597_s1 = inlined_call_operand.vmem [shape: bf16[16,32], index: 1, kind: input, shape index: {}]   ;;  %s598_s2 = inlined_call_operand.vmem [shape: f32[1,32], index: 2, kind: input, shape index: {}]   ;;  %s599_s3 = inlined_call_operand.vmem [shape: bf16[32,32], index: 3, kind: input, shape index: {}]   ;;  %s600_s4 = inlined_call_operand.vmem [shape: f32[1,32], index: 4, kind: input, shape index: {}]   ;;  %s601_s5 = inlined_call_operand.vmem [shape: bf16[32,64], index: 5, kind: input, shape index: {}]   ;;  %s602_s6 = inlined_call_operand.vmem [shape: f32[1,64], index: 6, kind: input, shape index: {}]   ;;  %s603_s7 = inlined_call_operand.vmem [shape: bf16[64,8], index: 7, kind: input, shape index: {}]   ;;  %s604_s8 = inlined_call_operand.vmem [shape: f32[1,8], index: 8, kind: input, shape index: {}]   ;;  %s605_s9 = inlined_call_operand.hbm [shape: f32[8,8], index: 9, kind: output, shape index: {}]  }
   0x1   :  { %15 = vsyncpa [#allocation4], 0  ;;  %s472_s30 = smov [#allocation2]   ;;  %s424_s13 = scalar_lea.hbm %s596_s0, 128 }
   0x2   :  { %s22_s10 = sshll.u32 %s472_s30, 4  ;;  %p425_p0 = scmp.ne.s32.totalorder %s596_s0, %s424_s13  ;;  %s23_s10 = int_to_ptr.vmem [resolvable:$true] %s22_s10 }
   0x3   :  { %p428_p1 = scmp.lt.u32.totalorder %s424_s13, %s596_s0 }
   0x5   :  { %p430_p2 = pnand %p428_p1, %p425_p0 }
   0x7   :  { %433 = shalt.err (!%p430_p2)
}
   0x8   :  { %s434_s18 = scalar_lea.vmem %s23_s10, 128  ;;  %p439_p4 = scmp.lt.s32.totalorder %s23_s10, %s23_s10 }
   0x9   :  { %p435_p3 = scmp.ne.s32.totalorder %s23_s10, %s434_s18  ;;  %p440_p5 = scmp.lt.s32.totalorder %s434_s18, %s434_s18 }
   0xb   :  { %p441_p6 = por %p440_p5, %p439_p4 }
   0xd   :  { %p442_p7 = pnand %p441_p6, %p435_p3 }
   0xf   :  { %445 = shalt.err (!%p442_p7)
}
  0x10   :  { %25 = dma.hbm_to_vmem [thread:$0]  %s596_s0, 128, %s23_s10, [#allocation3]  }
  0x11   :  { %468 = dma.done.wait [#allocation3], 128  }
  0x12   :  { %469 = vsyncadd [#allocation3], 4294967168  ;;  %v473_v0 = vmov 0.0   ;;  %vm474_vm0 = vmmov 0   ;;  %v415_v1 = vld [vmem:[%s597_s1] sm:$0xff]   ;;  %vm63_vm1 = vcmask 130048  }
  0x13   :  { %376 = vmatprep.subr.bf16.mxu0 %v473_v0  ;;  %378 = vmatprep.mubr.msk.bf16.mxu0 %vm474_vm0, %v473_v0  ;;  %v46_v2 = vld [vmem:[#allocation2] sm:$0xff]  ;;  %v417_v5 = vld [vmem:[%s599_s3 + $0x8] sm:$0xff]   ;;  %vm132_vm2 = vcmask 261120   ;;  %v475_v14 = vmov 0   ;;  %v422_v27 = vld [vmem:[%s603_s7 + $0x10] sm:$0xff]   ;;  %vm285_vm3 = vcmask 523264  }
  0x14   :  { %398 = vmatprep.subr.bf16.mxu1 %v473_v0  ;;  %406 = vmatprep.mubr.msk.bf16.mxu1 %vm474_vm0, %v473_v0  ;;  %v47_v3 = vpack.c.bf16 %v46_v2, %v46_v2  ;;  %v416_v4 = vld [vmem:[%s599_s3] sm:$0xff]   ;;  %v419_v16 = vld [vmem:[%s601_s5 + $0x8] sm:$0xff]   ;;  %v423_v28 = vld [vmem:[%s603_s7 + $0x18] sm:$0xff]   ;;  %s476_s20 = smov [#allocation5]   ;;  %vm329_vm4 = vcmask 64512  }
  0x15   :  { %377 = vmatpush3.bf16.msra.mxu0 %v415_v1  ;;  %v346_v6 = vld [vmem:[%s598_s2] ss:$0 sm:$0xff]  ;;  %v421_v18 = vld [vmem:[%s603_s7 + $0x8] sm:$0xff]  }
  0x16   :  { %382 = vmatprep.subr.bf16.mxu0 %v473_v0  ;;  %v418_v13 = vld [vmem:[%s601_s5] sm:$0xff]  }
  0x17   :  { %v420_v17 = vld [vmem:[%s603_s7] sm:$0xff]   ;;  %s337_s7 = sshll.u32 %s476_s20, 4  ;;  %s338_s7 = int_to_ptr.vmem [resolvable:$true] %s337_s7 }
  0x18   :  { %379 = vmatmul.mubr.msk.bf16.vlgmr.msra.gmra.mrb[0].mxu0 %vm63_vm1, %v47_v3  ;;  %399 = vmatpush3.bf16.msra.mxu1 %v420_v17  ;;  %v349_v19 = vld [vmem:[%s600_s4] ss:$0 sm:$0xff]  ;;  %p451_p9 = scmp.lt.s32.totalorder %s338_s7, %s338_s7 }
  0x19   :  { %383 = vmatpush3.bf16.msra.mxu0 %v416_v4  ;;  %386 = vmatprep.mubr.msk.bf16.mxu0 %vm474_vm0, %v473_v0  ;;  %v353_v29 = vld [vmem:[%s602_s6] ss:$0 sm:$0xff]  ;;  %s446_s6 = scalar_lea.vmem %s338_s7, 128 }
  0x1a   :  { %384 = vmatprep.subr.bf16.mxu0 %v473_v0  ;;  %400 = vmatprep.subr.bf16.mxu1 %v473_v0  ;;  %v357_v37 = vld [vmem:[%s604_s8] ss:$0 sm:$0xff]  ;;  %p447_p8 = scmp.ne.s32.totalorder %s338_s7, %s446_s6  ;;  %p452_p10 = scmp.lt.s32.totalorder %s446_s6, %s446_s6 }
  0x1c   :  { %401 = vmatpush3.bf16.msra.mxu1 %v421_v18  ;;  %p453_p11 = por %p452_p10, %p451_p9 }
  0x1d   :  { %385 = vmatpush3.bf16.msra.mxu0 %v417_v5  ;;  %402 = vmatprep.subr.bf16.mxu1 %v473_v0 }
  0x1e   :  { %390 = vmatprep.subr.bf16.mxu0 %v473_v0  ;;  %p454_p12 = pnand %p453_p11, %p447_p8 }
  0x20   :  { %403 = vmatpush3.bf16.msra.mxu1 %v422_v27 }
  0x21   :  { %404 = vmatprep.subr.bf16.mxu1 %v473_v0 }
  0x24   :  { %405 = vmatpush3.bf16.msra.mxu1 %v423_v28 }
  0xeb   :  { %v101_v7 = vpop.f32.mrb[0].mxu0 }
  0xec   :  { %v102_v8 = vadd.f32 %v346_v6, %v101_v7  ;;  %v380_v9 = vpop.f32.mrb[1].mxu0 }
  0xed   :  { %v104_v10 = vpop.f32.mrb[2].mxu0 }
  0xee   :  { %v107_v11 = vpack.c.bf16 %v102_v8, %v102_v8  ;;  %v381_v12 = vpop.f32.mrb[3].mxu0 }
  0xf0   :  { %v108_v15 = vmax.bf16 %v475_v14, %v107_v11 }
  0xf2   :  { %387 = vmatmul.mubr.msk.bf16.vlgmr.msra.gmra.mrb[4].mxu0 %vm132_vm2, %v108_v15 }
  0xf3   :  { %391 = vmatpush3.bf16.msra.mxu0 %v418_v13  ;;  %394 = vmatprep.mubr.msk.bf16.mxu0 %vm474_vm0, %v473_v0 }
  0xf4   :  { %392 = vmatprep.subr.bf16.mxu0 %v473_v0 }
  0xf7   :  { %393 = vmatpush3.bf16.msra.mxu0 %v419_v16 }
 0x1c5   :  { %v170_v20 = vpop.f32.mrb[4].mxu0 }
 0x1c6   :  { %v171_v21 = vadd.f32 %v349_v19, %v170_v20  ;;  %v388_v22 = vpop.f32.mrb[5].mxu0 }
 0x1c7   :  { %v173_v23 = vpop.f32.mrb[6].mxu0 }
 0x1c8   :  { %v176_v24 = vpack.c.bf16 %v171_v21, %v171_v21  ;;  %v389_v25 = vpop.f32.mrb[7].mxu0 }
 0x1ca   :  { %v177_v26 = vmax.bf16 %v475_v14, %v176_v24 }
 0x1cc   :  { %395 = vmatmul.mubr.msk.bf16.vlgmr.msra.gmra.mrb[8].mxu0 %vm132_vm2, %v177_v26 }
 0x29f   :  { %v238_v30 = vpop.f32.mrb[8].mxu0 }
 0x2a0   :  { %v239_v31 = vadd.f32 %v353_v29, %v238_v30  ;;  %v396_v32 = vpop.f32.mrb[9].mxu0 }
 0x2a1   :  { %v241_v33 = vpop.f32.mrb[10].mxu0 }
 0x2a2   :  { %v244_v34 = vpack.c.bf16 %v239_v31, %v239_v31  ;;  %v397_v35 = vpop.f32.mrb[11].mxu0 }
 0x2a4   :  { %v245_v36 = vmax.bf16 %v475_v14, %v244_v34 }
 0x2a6   :  { %407 = vmatmul.mubr.msk.bf16.vlgmr.msra.gmra.mrb[0].mxu1 %vm285_vm3, %v245_v36 }
 0x379   :  { %v323_v38 = vpop.f32.mrb[0].mxu1 }
 0x37a   :  { %v324_v39 = vadd.f32 %v357_v37, %v323_v38  ;;  %v408_v40 = vpop.f32.mrb[1].mxu1 }
 0x37b   :  { %v326_v41 = vpop.f32.mrb[2].mxu1 }
 0x37c   :  { %v409_v42 = vpop.f32.mrb[3].mxu1  ;;  %330 = vst.msk [vmem:[#allocation5] sm:$0xff] %vm329_vm4, %v324_v39 }
 0x37d   :  { %457 = shalt.err (!%p454_p12)
}
 0x37e   :  { %s458_s8 = scalar_lea.hbm %s605_s9, 128 }
 0x37f   :  { %p459_p13 = scmp.ne.s32.totalorder %s605_s9, %s458_s8  ;;  %p462_p0 = scmp.lt.u32.totalorder %s458_s8, %s605_s9 }
 0x381   :  { %p464_p1 = pnand %p462_p0, %p459_p13 }
 0x383   :  { %467 = shalt.err (!%p464_p1)
}
 0x384   :  { %340 = dma.vmem_to_hbm [thread:$0]  %s338_s7, 128, %s605_s9, [#allocation4]  }
 0x385   :  { %470 = dma.done.wait [#allocation4], 128  }
 0x386   :  { %471 = vsyncadd [#allocation4], 4294967168 }
 0x387   :  { %344 = vsyncpa [#allocation3], 1 }
 0x388   :  { %345 = vsyncpa [#allocation4], 1 }

</bundles_post_ra>
